<compile_context>
chip_gen: v7x
topology: tpu7x:2x2x1
jax: 0.10.0
libtpu: 0.0.40
codegen_flags: <defaults>
</compile_context>

<pallas_src>
import functools
import numpy as np
import jax
import jax.numpy as jnp
from jax.experimental import pallas as pl
from jax.experimental.pallas import tpu as pltpu


# ---------------------------------------------------------------------------
# Tiling choice
# ---------------------------------------------------------------------------
def _choose_tile_l(L, C, itemsize, target_block_bytes):
    """Largest lane-dense L tile: multiple of 128 that divides L, with the
    (C, TILE_L) block kept <= target_block_bytes. Falls back to full L when L
    is not 128-aligned (block last dim == full array dim is always legal)."""
    max_tl = max(128, target_block_bytes // max(1, C * itemsize))
    if L % 128 != 0 or L <= max_tl:
        return L
    tl = (max_tl // 128) * 128
    while tl >= 128:
        if L % tl == 0:
            return tl
        tl -= 128
    return L  # unreachable when L % 128 == 0 (128 always divides L then)


# ---------------------------------------------------------------------------
# Kernel
# ---------------------------------------------------------------------------
def _make_permute_kernel(perm):
    """perm is a static Python tuple -> gather is compile-time constant."""
    perm = tuple(int(p) for p in perm)
    identity = perm == tuple(range(len(perm)))

    def kernel(x_ref, o_ref):
        # x_ref / o_ref: VMEM (1, C, TILE_L); C on sublanes, L on lanes.
        if identity:
            o_ref[...] = x_ref[...]
        else:
            # Static row slices (sublane relayout on the VPU/XLU, free vs the
            # HBM roofline) + a single full-tile unmasked store.
            rows = [x_ref[0, c:c + 1, :] for c in perm]
            o_ref[0] = jnp.concatenate(rows, axis=0)

    return kernel


# ---------------------------------------------------------------------------
# pallas_call builder (cached per shape/dtype/permutation)
# ---------------------------------------------------------------------------
@functools.lru_cache(maxsize=None)
def _build_permute_call(B, C, L, dtype, perm, target_block_bytes):
    dtype = np.dtype(dtype) if not hasattr(dtype, "itemsize") else dtype
    tile_l = _choose_tile_l(L, C, dtype.itemsize, target_block_bytes)
    grid = (B, L // tile_l)
    kernel = _make_permute_kernel(perm)
    return pl.pallas_call(
        kernel,
        out_shape=jax.ShapeDtypeStruct((B, C, L), dtype),
        grid=grid,
        # Block covers full C (satisfies sublane alignment for any C) and a
        # 128-multiple (or full) slice of L -> fully aligned, lane-dense DMAs.
        in_specs=[pl.BlockSpec((1, C, tile_l), lambda b, lt: (b, 0, lt))],
        out_specs=pl.BlockSpec((1, C, tile_l), lambda b, lt: (b, 0, lt)),
        compiler_params=pltpu.CompilerParams(
            dimension_semantics=("parallel", "parallel"),
            vmem_limit_bytes=32 * 1024 * 1024,  # safe on v5e/v6e/v7x
        ),
    )


def permute_channels(x, indices, *, max_block_bytes=2 * 1024 * 1024):
    """x: [B, C, L], indices: int[C]  ->  x[:, indices, :] via Pallas."""
    B, C, L = x.shape
    perm = tuple(int(i) for i in np.asarray(indices).reshape(-1))
    assert len(perm) == C
    call = _build_permute_call(B, C, L, x.dtype, perm, int(max_block_bytes))
    return call(x)


# ---------------------------------------------------------------------------
# Module wrapper (same semantics as the PyTorch Permute2d)
# ---------------------------------------------------------------------------
class Permute2d:
    """JAX/Pallas port of glow Permute2d (deterministic init)."""

    def __init__(self, num_channels, shuffle):
        self.num_channels = num_channels
        self.indices = np.arange(num_channels - 1, -1, -1).astype(np.int64)
        self.indices_inverse = np.zeros(num_channels, dtype=np.int64)
        for i in range(num_channels):
            self.indices_inverse[self.indices[i]] = i
        if shuffle:
            self.reset_indices()

    def reset_indices(self):
        # deterministic "shuffle" (synthetic init; original uses np.random.shuffle)
        rng = np.random.RandomState(0)
        rng.shuffle(self.indices)
        for i in range(self.num_channels):
            self.indices_inverse[self.indices[i]] = i

    def forward(self, x, reverse=False):
        assert x.ndim == 3
        idx = self.indices_inverse if reverse else self.indices
        return permute_channels(x, idx)

    __call__ = forward


if __name__ == "__main__":
    B, C, L = 2, 4, 128
    key = jax.random.PRNGKey(0)
    x = jax.random.normal(key, (B, C, L), dtype=jnp.float32)

    # reversal permutation (shuffle=False)
    mod = Permute2d(C, shuffle=False)
    y = jax.block_until_ready(mod(x))
    y_ref = x[:, jnp.asarray(mod.indices), :]
    np.testing.assert_array_equal(np.asarray(y), np.asarray(y_ref))

    # reverse direction must invert it
    x_back = jax.block_until_ready(mod(y, reverse=True))
    np.testing.assert_array_equal(np.asarray(x_back), np.asarray(x))

    # shuffled permutation (deterministic seed)
    mod_s = Permute2d(C, shuffle=True)
    y_s = jax.block_until_ready(mod_s(x))
    y_s_ref = x[:, jnp.asarray(mod_s.indices), :]
    np.testing.assert_array_equal(np.asarray(y_s), np.asarray(y_s_ref))
    x_s_back = jax.block_until_ready(mod_s(y_s, reverse=True))
    np.testing.assert_array_equal(np.asarray(x_s_back), np.asarray(x))

    # exercise the L-tiling path (TILE_L < L => grid (B, L/TILE_L)) by forcing
    # a small block budget at a small shape
    B2, C2, L2 = 2, 8, 512
    x2 = jax.random.normal(jax.random.PRNGKey(0), (B2, C2, L2), jnp.float32)
    mod2 = Permute2d(C2, shuffle=True)
    y2 = jax.block_until_ready(
        permute_channels(x2, mod2.indices, max_block_bytes=C2 * 128 * 4))
    y2_ref = x2[:, jnp.asarray(mod2.indices), :]
    np.testing.assert_array_equal(np.asarray(y2), np.asarray(y2_ref))

    print("KERNEL_OK")
</pallas_src>

<mosaic_0001>
module attributes {stable_mosaic.version = 11 : i64} {
  func.func @kernel(%arg0: i32, %arg1: i32, %arg2: memref<1x4x128xf32, #tpu.memory_space<vmem>>, %arg3: memref<1x4x128xf32, #tpu.memory_space<vmem>>) attributes {dimension_semantics = [#tpu.dimension_semantics<parallel>, #tpu.dimension_semantics<parallel>], iteration_bounds = array<i64: 2, 1>, scalar_prefetch = 0 : i64, scratch_operands = 0 : i64, tpu.core_type = #tpu.core_type<tc>, window_params = [{transform_indices = @transform_0, window_bounds = array<i64: 1, 4, 128>}, {transform_indices = @transform_1, window_bounds = array<i64: 1, 4, 128>}]} {
    %c0 = arith.constant 0 : index
    %c3 = arith.constant 3 : index
    %c0_0 = arith.constant 0 : index
    %0 = vector.load %arg2[%c0, %c3, %c0_0] : memref<1x4x128xf32, #tpu.memory_space<vmem>>, vector<1x1x128xf32>
    %1 = vector.shape_cast %0 : vector<1x1x128xf32> to vector<1x128xf32>
    %c0_1 = arith.constant 0 : index
    %c2 = arith.constant 2 : index
    %c0_2 = arith.constant 0 : index
    %2 = vector.load %arg2[%c0_1, %c2, %c0_2] : memref<1x4x128xf32, #tpu.memory_space<vmem>>, vector<1x1x128xf32>
    %3 = vector.shape_cast %2 : vector<1x1x128xf32> to vector<1x128xf32>
    %c0_3 = arith.constant 0 : index
    %c1 = arith.constant 1 : index
    %c0_4 = arith.constant 0 : index
    %4 = vector.load %arg2[%c0_3, %c1, %c0_4] : memref<1x4x128xf32, #tpu.memory_space<vmem>>, vector<1x1x128xf32>
    %5 = vector.shape_cast %4 : vector<1x1x128xf32> to vector<1x128xf32>
    %c0_5 = arith.constant 0 : index
    %c0_6 = arith.constant 0 : index
    %c0_7 = arith.constant 0 : index
    %6 = vector.load %arg2[%c0_5, %c0_6, %c0_7] : memref<1x4x128xf32, #tpu.memory_space<vmem>>, vector<1x1x128xf32>
    %7 = vector.shape_cast %6 : vector<1x1x128xf32> to vector<1x128xf32>
    %8 = tpu.concatenate %1, %3, %5, %7 in 0 : vector<1x128xf32>, vector<1x128xf32>, vector<1x128xf32>, vector<1x128xf32> -> vector<4x128xf32>
    %c0_8 = arith.constant 0 : index
    %c0_9 = arith.constant 0 : index
    %c0_10 = arith.constant 0 : index
    %9 = vector.load %arg3[%c0_8, %c0_9, %c0_10] : memref<1x4x128xf32, #tpu.memory_space<vmem>>, vector<1x4x128xf32>
    %10 = vector.shape_cast %9 : vector<1x4x128xf32> to vector<4x128xf32>
    %11 = vector.shape_cast %8 : vector<4x128xf32> to vector<1x4x128xf32>
    tpu.vector_store %arg3[%c0_8, %c0_9, %c0_10], %11 {strides = array<i32>} : memref<1x4x128xf32, #tpu.memory_space<vmem>>, vector<1x4x128xf32>,
    return
  }
  func.func @transform_0(%arg0: i32, %arg1: i32) -> (i32, i32, i32) {
    %c0_i32 = arith.constant 0 : i32
    %c0_i32_0 = arith.constant 0 : i32
    return %arg0, %c0_i32, %arg1 : i32, i32, i32
  }
  func.func @transform_1(%arg0: i32, %arg1: i32) -> (i32, i32, i32) {
    %c0_i32 = arith.constant 0 : i32
    %c0_i32_0 = arith.constant 0 : i32
    return %arg0, %c0_i32, %arg1 : i32, i32, i32
  }
}

</mosaic_0001>

<bundles_post_ra>
// kernel: tpu_custom_call.1
= control target key start
LH: loop header
LB: loop body
LE: loop exit
PB: predicated region body
PF: predicated region fallthrough
CT: control target
= control target key end

     0   :  { %6 = vsyncpa [#allocation3], 0  ;;  %s637_s0 = inlined_call_operand.hbm [shape: f32[2,4,128], index: 0, kind: input, shape index: {}]   ;;  %s638_s1 = inlined_call_operand.hbm [shape: f32[2,4,128], index: 1, kind: output, shape index: {}]  }
   0x1   :  { %8 = vsyncpa [#allocation3 + $0x1], 0 }
   0x2   :  { %9 = vsyncpa [#allocation4], 0 }
   0x3   :  { %11 = vsyncpa [#allocation4 + $0x1], 0  ;;  %s465_s6 = smov 0   ;;  %s467_s7 = smov 0  }
   0x4   :  { %s469_s8 = smov 0   ;;  %s471_s9 = smov 0  }
   0x5   :  { %s473_s10 = smov 0   ;;  %s475_s11 = smov 0  }
   0x6 LB: > { %s264_s12 = sadd.s32 4294967295, %s451_s11   ;;  %s265_s13 = sadd.s32 4294967294, %s451_s11   ;;  %s451_s11 = sphi %s475_s11, %s17_s11   ;;  %s447_s10 = sphi %s473_s10, %s654_s10   ;;  %s443_s9 = sphi %s471_s9, %s653_s9   ;;  %s439_s8 = sphi %s469_s8, %s652_s8   ;;  %s435_s7 = sphi %s467_s7, %s651_s7   ;;  %s431_s6 = sphi %s465_s6, %s650_s6  }
   0x7   : > { %s29_s14 = sadd.s32 1, %s447_s10  ;;  %s38_s15 = sadd.s32 1, %s439_s8 }
   0x8   : > { %p31_p0 = scmp.ge.s32.totalorder %s29_s14, 2  ;;  %p45_p1 = scmp.ne.s32.totalorder %s439_s8, %s435_s7 }
   0x9   : > { %p46_p2 = scmp.eq.s32.totalorder %s451_s11, 0  ;;  %p51_p3 = scmp.ne.s32.totalorder %s435_s7, %s431_s6 }
   0xa   : > { %s656_s14 = smov (%p31_p0, %s29_s14), 0  ;;  %p52_p5 = scmp.eq.s32.totalorder %s264_s12, 0 }
   0xb   : > { %p506_p4 = por %p46_p2, %p45_p1  ;;  %s33_s17 = ssub.s32 %s447_s10, %s656_s14 }
   0xc   : > { %p77_p6 = scmp.eq.s32.totalorder %s264_s12, 1  ;;  %p36_p7 = scmp.eq.s32.totalorder %s33_s17, 0 }
   0xd   : > { %p512_p8 = por %p52_p5, %p51_p3  ;;  %p83_p10 = scmp.eq.s32.totalorder %s265_s13, 1 }
   0xe   : > { %p516_p9 = por %p77_p6, %p45_p1  ;;  %p289_p13 = scmp.lt.s32.totalorder %s451_s11, 2 }
   0xf   : > { %s521_s20 = scalar_select %p36_p7, %s439_s8, %s38_s15  }
  0x10   : > { %s642_s19 = scalar_select %p516_p9, 1, 0 }
  0x11   : > { %p523_p11 = por %p83_p10, %p51_p3  ;;  %s103_s22 = sand.u32 1, %s439_s8  }
  0x12   : > { %s268_s23 = sshll.u32 %s103_s22, 2  ;;  %s269_s24 = sshll.u32 %s447_s10, 6 }
  0x13   : > { %s643_s21 = scalar_select %p523_p11, 1, 0 }
  0x14   : > { %s534_s27 = scalar_lea.hbm %s637_s0, %s269_s24  ;;  %s107_s28 = scalar_lea.vmem [#allocation2], %s268_s23 }
  0x15   : > { %s115_s29 = sshll.u32 %s107_s28, 4  ;;  %p540_p0 = pnand %p289_p13, %p506_p4  ;;  %s536_s29 = int_to_ptr.vmem [resolvable:$true] %s115_s29 }
  0x16   : > { %s104_s2 = scalar_lea.sflag [#allocation3], %s103_s22  ;;  %s339_s3 = scalar_lea.hbm %s534_s27, 64 }
  0x17   : > { %p340_p3 = scmp.ne.s32.totalorder %s534_s27, %s339_s3  ;;  %p341_p5 = pneg %p540_p0 }
  0x18   : > { %s344_s12 = scalar_lea.hbm %s637_s0, 128  ;;  %p345_p4 = scmp.lt.u32.totalorder %s534_s27, %s637_s0 }
  0x19   : > { %p342_p6 = pnand %p341_p5, %p340_p3  ;;  %p346_p10 = scmp.lt.u32.totalorder %s344_s12, %s339_s3 }
  0x1a   : > { %p348_p12 = scmp.lt.u32.totalorder %s339_s3, %s534_s27 }
  0x1b   : > { %p343_p7 = pneg %p342_p6  ;;  %p347_p13 = por %p346_p10, %p345_p4 }
  0x1d   : > { %p349_p1 = por %p348_p12, %p347_p13 }
  0x1f   : > { %p350_p2 = pnand %p349_p1, %p343_p7 }
  0x21   : > { %353 = shalt.err (!%p350_p2)
}
  0x22   : > { %s354_s16 = scalar_lea.vmem %s536_s29, 64  ;;  %s453_s17 = smov [#allocation2]  }
  0x23   : > { %p355_p3 = scmp.ne.s32.totalorder %s536_s29, %s354_s16  ;;  %s359_s22 = sshll.u32 %s453_s17, 4  ;;  %s360_s22 = int_to_ptr.vmem [resolvable:$false] %s359_s22 }
  0x24   : > { %s361_s23 = scalar_lea.vmem %s360_s22, 128  ;;  %p362_p9 = scmp.lt.s32.totalorder %s536_s29, %s360_s22 }
  0x25   : > { %p357_p6 = pnand %p355_p3, %p341_p5  ;;  %p363_p4 = scmp.lt.s32.totalorder %s361_s23, %s354_s16 }
  0x27   : > { %p358_p11 = pneg %p357_p6  ;;  %p364_p10 = por %p363_p4, %p362_p9 }
  0x29   : > { %p365_p12 = pnand %p364_p10, %p358_p11 }
  0x2b   : > { %368 = shalt.err (!%p365_p12)
}
  0x2c   : > { %284 = dma.hbm_to_vmem [thread:$0]  (!%p540_p0), %s534_s27, 64, %s536_s29, %s104_s2  }
  0x2d   : > { %p645_p1 = scmp.lt.s32.totalorder %s451_s11, 3  ;;  %p646_p2 = scmp.ge.s32.totalorder %s451_s11, 1 }
  0x2f   : > { %p121_p5 = pnand %p646_p2, %p645_p1 }
  0x30   : > { %s576_s24 = sand.u32 (!%p121_p5), 1, %s435_s7  }
  0x31   : > { %124 = sbr.rel (%p121_p5) target bundleno = 84 (0x54), region = 24  ;;  %s271_s25 = sshll.u32 (!%p121_p5), %s576_s24, 2 }
  0x32   : > { %s127_s26 = scalar_lea.sflag (!%p121_p5), [#allocation3], %s576_s24  ;;  %s130_s28 = scalar_lea.vmem (!%p121_p5), [#allocation2], %s271_s25 }
  0x38   : > { %422 = dma.done.wait (%p512_p8), %s127_s26, 64  }
  0x39   : > { %424 = vsyncadd (%p512_p8), %s127_s26, 4294967232  ;;  %vm162_vm0 = vcmask 1040384   ;;  %vm164_vm1 = vcmask 1041408   ;;  %v149_v0 = vld [vmem:[%s130_s28 + $0x3] sm:$0x1]  ;;  %s148_s27 = scalar_lea.vmem [#allocation5], %s271_s25 }
  0x3a   : > { %v150_v1 = vld [vmem:[%s130_s28 + $0x2] sm:$0x1]  ;;  %v151_v2 = vld [vmem:[%s130_s28 + $0x1] sm:$0x1]  ;;  %v152_v3 = vld [vmem:[%s130_s28] sm:$0x1] }
  0x3b   : > { %v154_v4 = vrot.slane %v150_v1, 7  ;;  %v157_v5 = vrot.slane %v151_v2, 6  ;;  %s184_s29 = sshll.u32 %s148_s27, 4  ;;  %s274_s30 = sshll.u32 %s443_s9, 6  ;;  %v160_v6 = vrot.slane %v152_v3, 5  ;;  %vm166_vm2 = vcmask 1042432   ;;  %s585_s29 = int_to_ptr.vmem [resolvable:$true] %s184_s29 }
  0x3c   : > { %s590_s3 = scalar_lea.hbm %s638_s1, %s274_s30  ;;  %s170_s4 = scalar_lea.sflag [#allocation4], %s576_s24 }
  0x3d   : > { %v163_v7 = vsel %vm162_vm0, %v149_v0, %v154_v4  ;;  %s369_s5 = scalar_lea.vmem %s585_s29, 64  ;;  %p647_p9 = scmp.ne.s32.totalorder %s642_s19, 0 }
  0x3e   : > { %v165_v8 = vsel %vm164_vm1, %v163_v7, %v157_v5  ;;  %p370_p8 = scmp.ne.s32.totalorder %s585_s29, %s369_s5  ;;  %s454_s9 = smov [#allocation5]  }
  0x3f   : > { %v167_v9 = vsel %vm166_vm2, %v165_v8, %v160_v6  ;;  %s373_s12 = sshll.u32 %s454_s9, 4  ;;  %s374_s12 = int_to_ptr.vmem [resolvable:$false] %s373_s12 }
  0x40   : > { %168 = vst [vmem:[%s148_s27] sm:$0xf] %v167_v9  ;;  %p371_p11 = pnand %p370_p8, %p647_p9  ;;  %s375_s13 = scalar_lea.vmem %s374_s12, 128 }
  0x41   : > { %p376_p7 = scmp.lt.s32.totalorder %s585_s29, %s374_s12  ;;  %p377_p13 = scmp.lt.s32.totalorder %s375_s13, %s369_s5 }
  0x42   : > { %p372_p0 = pneg %p371_p11 }
  0x43   : > { %p378_p3 = por %p377_p13, %p376_p7 }
  0x45   : > { %p379_p6 = pnand %p378_p3, %p372_p0 }
  0x47   : > { %382 = shalt.err (!%p379_p6)
}
  0x48   : > { %s383_s15 = scalar_lea.hbm %s590_s3, 64  ;;  %s387_s22 = scalar_lea.hbm %s638_s1, 128 }
  0x49   : > { %p384_p4 = scmp.ne.s32.totalorder %s590_s3, %s383_s15  ;;  %p388_p1 = scmp.lt.u32.totalorder %s590_s3, %s638_s1 }
  0x4a   : > { %p389_p2 = scmp.lt.u32.totalorder %s387_s22, %s383_s15  ;;  %p391_p8 = scmp.lt.u32.totalorder %s383_s15, %s590_s3 }
  0x4b   : > { %p385_p10 = pnand %p384_p4, %p647_p9 }
  0x4c   : > { %p390_p5 = por %p389_p2, %p388_p1 }
  0x4d   : > { %p386_p12 = pneg %p385_p10 }
  0x4e   : > { %p392_p11 = por %p391_p8, %p390_p5 }
  0x50   : > { %p393_p0 = pnand %p392_p11, %p386_p12 }
  0x52   : > { %396 = shalt.err (!%p393_p0)
}
  0x53   : > { %279 = dma.vmem_to_hbm [thread:$0]  (%p647_p9), %s585_s29, 64, %s590_s3, %s170_s4  }
  0x54 PF: > { %s196_s25 = sand.u32 1, %s431_s6   ;;  %p648_p7 = scmp.ne.s32.totalorder %s643_s21, 0 }
  0x55   : > { %p649_p13 = scmp.ge.s32.totalorder %s451_s11, 2  ;;  %s197_s26 = scalar_lea.sflag [#allocation4], %s196_s25 }
  0x57   : > { %p286_p3 = pnand %p649_p13, %p648_p7 }
  0x59   : > { %426 = dma.done.wait (!%p286_p3), %s197_s26, 64  }
  0x5a   : > { %428 = vsyncadd (!%p286_p3), %s197_s26, 4294967232  ;;  %s17_s11 = sadd.s32 1, %s451_s11   ;;  %s650_s6 = smov %s435_s7 }
  0x5b   : > { %p14_p6 = scmp.ge.s32.totalorder %s17_s11, 4   ;;  %s651_s7 = smov %s439_s8 }
  0x5c   : > { %s652_s8 = smov %s521_s20  ;;  %s653_s9 = smov %s447_s10 }
  0x5d   : > { %s654_s10 = smov %s656_s14  ;;  %16 = sbr.rel (!%p14_p6) target bundleno = 6 (0x6), region = 69 }
  0x64   :  { %202 = vsyncpa [#allocation3], 1 }
  0x65   :  { %204 = vsyncpa [#allocation3 + $0x1], 1 }
  0x66   :  { %205 = vsyncpa [#allocation4], 1 }
  0x67   :  { %207 = vsyncpa [#allocation4 + $0x1], 1 }

</bundles_post_ra>
